<compile_context>
chip_gen: v7x
topology: tpu7x:2x2x1
jax: 0.10.0
libtpu: 0.0.40
codegen_flags: <defaults>
</compile_context>

<pallas_src>
import functools

import jax
import jax.numpy as jnp
from jax.experimental import pallas as pl
from jax.experimental.pallas import tpu as pltpu

K_STEPS = 5
ALPHA = 0.8

_LANE = 128
_MiB = 1 << 20


def _round_up(v, m):
    return ((v + m - 1) // m) * m


def _vmem_capacity_bytes():
    """Per-TensorCore VMEM capacity with a generation-aware fallback."""
    try:
        return int(pltpu.get_tpu_info().vmem_capacity_bytes)
    except Exception:
        pass
    try:
        kind = jax.devices()[0].device_kind.lower()
    except Exception:
        kind = ""
    if "v7" in kind or "7x" in kind:
        return 64 * _MiB
    return 128 * _MiB          # v5e / v5p / v6e


# ---------------------------------------------------------------------------
# gcn_norm (dense, built directly at the padded size) -- plain JAX glue.
# ---------------------------------------------------------------------------
def _gcn_norm_dense(edge_index, num_nodes, pad_to=None):
    """Dense A_hat = D^{-1/2} (A + I_remaining) D^{-1/2}, PyG gcn_norm semantics.

    Self-loops are only added for nodes that do not already have one
    (add_remaining_self_loops).  If `pad_to` is given, the matrix is scattered
    straight into the padded (pad_to, pad_to) buffer (no extra pad-copy pass).
    """
    n_out = num_nodes if pad_to is None else pad_to
    src, dst = edge_index[0], edge_index[1]
    e_w = jnp.ones(src.shape[0], jnp.float32)

    is_loop = (src == dst).astype(jnp.float32)
    has_loop = jnp.zeros((num_nodes,), jnp.float32).at[src].add(is_loop) > 0
    loop_idx = jnp.arange(num_nodes, dtype=edge_index.dtype)
    loop_w = jnp.where(has_loop, 0.0, 1.0)   # weight-0 loops are inert

    row = jnp.concatenate([src, loop_idx])   # source
    col = jnp.concatenate([dst, loop_idx])   # target
    ew = jnp.concatenate([e_w, loop_w])

    deg = jnp.zeros((num_nodes,), jnp.float32).at[col].add(ew)
    dinv = jnp.where(deg > 0, jax.lax.rsqrt(deg), 0.0)
    norm = dinv[row] * ew * dinv[col]
    # message from x[row] aggregated at col -> A_hat[col, row] = norm
    return jnp.zeros((n_out, n_out), jnp.float32).at[col, row].add(norm)


# ---------------------------------------------------------------------------
# Kernels
# ---------------------------------------------------------------------------
def appnp_resident_kernel(x0_ref, a_hbm_ref, out_ref, a_vmem, sems,
                          *, K, alpha, NT, TM):
    """Whole problem resident in VMEM; A load overlapped with step-0 compute.

    x0_ref   : [Np, Fp] f32   initial features (VMEM)
    a_hbm_ref: [Np, Np] bf16  normalized adjacency (HBM / ANY)
    out_ref  : [Np, Fp] f32   output -- doubles as the iterate buffer
    a_vmem   : [Np, Np] bf16  VMEM-resident copy of A_hat (scratch)
    sems     : DMA semaphores, one per row panel
    """
    # Kick off every row-panel DMA up front; the DMA engine drains them in order.
    for p in range(NT):
        pltpu.make_async_copy(a_hbm_ref.at[pl.ds(p * TM, TM), :],
                              a_vmem.at[pl.ds(p * TM, TM), :],
                              sems.at[p]).start()

    x0 = x0_ref[...]
    x0_b = x0.astype(jnp.bfloat16)
    ax0 = jnp.float32(alpha) * x0                     # loop invariant, hoisted
    oma = jnp.float32(1.0 - alpha)

    # Step 0: consume each A panel as soon as it lands (DMA / MXU overlap).
    for p in range(NT):
        pltpu.make_async_copy(a_hbm_ref.at[pl.ds(p * TM, TM), :],
                              a_vmem.at[pl.ds(p * TM, TM), :],
                              sems.at[p]).wait()
        ax_p = jnp.dot(a_vmem[pl.ds(p * TM, TM), :], x0_b,
                       preferred_element_type=jnp.float32)
        out_ref[pl.ds(p * TM, TM), :] = oma * ax_p + ax0[p * TM:(p + 1) * TM, :]

    # Steps 1 .. K-1 on the VMEM-resident A_hat (K small & static -> unrolled).
    for _ in range(K - 1):
        ax = jnp.dot(a_vmem[...], out_ref[...].astype(jnp.bfloat16),
                     preferred_element_type=jnp.float32)
        out_ref[...] = oma * ax + ax0


def appnp_stream_kernel(a_ref, x0_ref, out_ref, xcur, xnew, *, K, NT, TM, alpha):
    """Fused K-step propagation streaming A_hat row panels from HBM.

    grid = (K, NT): k (recurrence, 'arbitrary') outermost, row panel i inner.

    a_ref  : [TM, Np] bf16 row panel of A_hat (streamed every step)
    x0_ref : [Np, Fp] f32  initial features (constant block -> fetched once)
    out_ref: [TM, Fp] f32  output panel (only meaningful at k == K-1)
    xcur   : [Np, Fp] bf16 iterate read at step k      (VMEM scratch)
    xnew   : [Np, Fp] bf16 iterate written at step k   (VMEM scratch)
    """
    k = pl.program_id(0)
    i = pl.program_id(1)

    @pl.when((k == 0) & (i == 0))
    def _init():
        xcur[...] = x0_ref[...].astype(jnp.bfloat16)

    ax = jnp.dot(a_ref[...], xcur[...], preferred_element_type=jnp.float32)
    row = pl.multiple_of(i * TM, TM)
    new = (jnp.float32(1.0 - alpha) * ax
           + jnp.float32(alpha) * x0_ref[pl.ds(row, TM), :])

    @pl.when(k < K - 1)
    def _stash():
        xnew[pl.ds(row, TM), :] = new.astype(jnp.bfloat16)

    @pl.when((k < K - 1) & (i == NT - 1))
    def _swap():                       # cheap VMEM->VMEM copy once per step
        xcur[...] = xnew[...]

    @pl.when(k == K - 1)
    def _emit():
        out_ref[...] = new


# ---------------------------------------------------------------------------
# Wrappers / path selection
# ---------------------------------------------------------------------------
def _pick_resident_panel(Np):
    for tm in (1024, 512, 256, 128):
        if Np % tm == 0:
            return tm
    return 128                          # unreachable: Np is a multiple of 128


def _pick_stream_panel(Np, Fp, cap):
    # fixed VMEM: x0 (possibly double-buffered) + 2 iterate scratch + headroom
    fixed = 2 * Np * Fp * 4 + 2 * Np * Fp * 2 + 4 * _MiB
    for tm in (1024, 512, 256, 128):
        if Np % tm:
            continue
        need = fixed + 2 * tm * Np * 2 + 2 * tm * Fp * 4
        if need <= int(0.8 * cap):
            return tm
    # For graphs so large that even TM=128 (or the resident iterate) does not
    # fit VMEM, the contraction dim would also need tiling; out of scope for
    # the molecular-scale graphs this op targets.
    return 128


def _appnp_resident(a_bf16, x0, K, alpha, cap):
    Np, Fp = x0.shape
    TM = _pick_resident_panel(Np)
    NT = Np // TM
    footprint = Np * Np * 2 + 8 * Np * Fp * 4
    vmem_limit = int(min(cap, footprint + 16 * _MiB))
    cost = pl.CostEstimate(flops=2 * K * Np * Np * Fp, transcendentals=0,
                           bytes_accessed=Np * Np * 2 + 2 * Np * Fp * 4)
    return pl.pallas_call(
        functools.partial(appnp_resident_kernel, K=K, alpha=alpha, NT=NT, TM=TM),
        out_shape=jax.ShapeDtypeStruct((Np, Fp), jnp.float32),
        # No grid -> single invocation; x0/out are whole arrays in VMEM,
        # A_hat stays in HBM and is DMA'd manually (overlapped with compute).
        in_specs=[
            pl.BlockSpec(memory_space=pltpu.MemorySpace.VMEM),   # x0 (f32)
            pl.BlockSpec(memory_space=pl.ANY),                   # A_hat (bf16, HBM)
        ],
        out_specs=pl.BlockSpec(memory_space=pltpu.MemorySpace.VMEM),
        scratch_shapes=[pltpu.VMEM((Np, Np), jnp.bfloat16),
                        pltpu.SemaphoreType.DMA((NT,))],
        compiler_params=pltpu.CompilerParams(vmem_limit_bytes=vmem_limit),
        cost_estimate=cost,
    )(x0, a_bf16)


def _appnp_streaming(a_bf16, x0, K, alpha, cap):
    Np, Fp = x0.shape
    TM = _pick_stream_panel(Np, Fp, cap)
    NT = Np // TM
    vmem_limit = int(min(cap,
                         2 * TM * Np * 2        # A panels, double-buffered
                         + 2 * Np * Fp * 4      # x0 resident block
                         + 2 * TM * Fp * 4      # output panels
                         + 2 * Np * Fp * 2      # xcur + xnew scratch
                         + 8 * _MiB))
    cost = pl.CostEstimate(
        flops=2 * K * Np * Np * Fp, transcendentals=0,
        bytes_accessed=K * Np * Np * 2 + Np * Fp * 4 + K * Np * Fp * 4)
    return pl.pallas_call(
        functools.partial(appnp_stream_kernel, K=K, NT=NT, TM=TM, alpha=alpha),
        out_shape=jax.ShapeDtypeStruct((Np, Fp), jnp.float32),
        grid=(K, NT),                             # K outermost, panels inner
        in_specs=[
            pl.BlockSpec((TM, Np), lambda k, i: (i, 0)),   # A row panel (streamed)
            pl.BlockSpec((Np, Fp), lambda k, i: (0, 0)),   # x0 (constant -> resident)
        ],
        out_specs=pl.BlockSpec((TM, Fp), lambda k, i: (i, 0)),
        scratch_shapes=[pltpu.VMEM((Np, Fp), jnp.bfloat16),   # xcur
                        pltpu.VMEM((Np, Fp), jnp.bfloat16)],  # xnew
        compiler_params=pltpu.CompilerParams(
            # Recurrence in k and a shared iterate scratch across i -> both
            # axes must stay sequential ("arbitrary").
            dimension_semantics=("arbitrary", "arbitrary"),
            vmem_limit_bytes=vmem_limit),
        cost_estimate=cost,
    )(a_bf16, x0)


def appnp_forward(x, edge_index, *, K=K_STEPS, alpha=ALPHA,
                  force_streaming=False):
    """x: [N, F] float32, edge_index: [2, E] int32. Returns [N, F]."""
    N, F = x.shape
    Np = max(_LANE, _round_up(N, _LANE))
    Fp = max(_LANE, _round_up(F, _LANE))

    # Build A_hat once, directly at the padded size; cast to bf16 once.
    a_bf16 = _gcn_norm_dense(edge_index, N, pad_to=Np).astype(jnp.bfloat16)
    x_pad = jnp.zeros((Np, Fp), jnp.float32).at[:N, :F].set(
        x.astype(jnp.float32))

    cap = _vmem_capacity_bytes()
    resident_bytes = Np * Np * 2 + 8 * Np * Fp * 4
    if (not force_streaming) and resident_bytes <= int(0.85 * cap):
        out_pad = _appnp_resident(a_bf16, x_pad, K, alpha, cap)
    else:
        out_pad = _appnp_streaming(a_bf16, x_pad, K, alpha, cap)
    return out_pad[:N, :F].astype(x.dtype)


def appnp_reference(x, edge_index, *, K=K_STEPS, alpha=ALPHA):
    a_hat = _gcn_norm_dense(edge_index, x.shape[0])
    h0 = x.astype(jnp.float32)
    h = h0
    for _ in range(K):
        h = (1.0 - alpha) * (a_hat @ h) + alpha * h0
    return h.astype(x.dtype)


if __name__ == "__main__":
    key = jax.random.PRNGKey(0)
    k_x, k_src, k_dst = jax.random.split(key, 3)

    N, F, E = 16, 32, 48  # small molecular-scale graph
    x = jax.random.normal(k_x, (N, F), dtype=jnp.float32)
    src = jax.random.randint(k_src, (E,), 0, N, dtype=jnp.int32)
    dst = jax.random.randint(k_dst, (E,), 0, N, dtype=jnp.int32)
    edge_index = jnp.stack([src, dst], axis=0)  # [2, E]

    ref = appnp_reference(x, edge_index)

    # Resident (whole-graph-in-VMEM, overlapped-A-load) path.
    out_res = jax.block_until_ready(appnp_forward(x, edge_index))
    if not jnp.allclose(out_res, ref, atol=2e-2, rtol=2e-2):
        raise AssertionError("Pallas APPNP (resident) mismatch vs reference")

    # Fused K-step streaming path, forced so both kernels are exercised.
    out_str = jax.block_until_ready(
        appnp_forward(x, edge_index, force_streaming=True))
    if not jnp.allclose(out_str, ref, atol=2e-2, rtol=2e-2):
        raise AssertionError("Pallas APPNP (streaming) mismatch vs reference")

    print("KERNEL_OK")
</pallas_src>

<mosaic_0001>
module attributes {stable_mosaic.version = 11 : i64} {
  func.func @appnp_resident_kernel(%arg0: memref<128x128xf32, #tpu.memory_space<vmem>>, %arg1: memref<128x128xbf16, #tpu.memory_space<any>>, %arg2: memref<128x128xf32, #tpu.memory_space<vmem>>, %arg3: memref<128x128xbf16, #tpu.memory_space<vmem>>, %arg4: memref<1x!tpu.dma_semaphore, #tpu.memory_space<semaphore_mem>>) attributes {dimension_semantics = [], scalar_prefetch = 0 : i64, scratch_operands = 2 : i64, tpu.core_type = #tpu.core_type<tc>} {
    %c0_i32 = arith.constant 0 : i32
    %c0_i32_0 = arith.constant 0 : i32
    %c0_i32_1 = arith.constant 0 : i32
    %0 = tpu.memref_slice %arg1[%c0_i32_0, %c0_i32_1] : memref<128x128xbf16, #tpu.memory_space<any>> -> memref<128x128xbf16, #tpu.memory_space<any>>
    %c0_i32_2 = arith.constant 0 : i32
    %c0_i32_3 = arith.constant 0 : i32
    %1 = tpu.memref_slice %arg3[%c0_i32_2, %c0_i32_3] : memref<128x128xbf16, #tpu.memory_space<vmem>> -> memref<128x128xbf16, #tpu.memory_space<vmem>>
    %2 = tpu.memref_slice %arg4[%c0_i32] : memref<1x!tpu.dma_semaphore, #tpu.memory_space<semaphore_mem>> -> memref<1x!tpu.dma_semaphore, #tpu.memory_space<semaphore_mem>>
    %3 = tpu.memref_squeeze %2 : memref<1x!tpu.dma_semaphore, #tpu.memory_space<semaphore_mem>> -> memref<!tpu.dma_semaphore, #tpu.memory_space<semaphore_mem>>
    tpu.enqueue_dma source(%0 : memref<128x128xbf16, #tpu.memory_space<any>>) target(%1 : memref<128x128xbf16, #tpu.memory_space<vmem>>) target_semaphore(%3 : memref<!tpu.dma_semaphore, #tpu.memory_space<semaphore_mem>>)
    %c0 = arith.constant 0 : index
    %c0_4 = arith.constant 0 : index
    %4 = vector.load %arg0[%c0, %c0_4] : memref<128x128xf32, #tpu.memory_space<vmem>>, vector<128x128xf32>
    %5 = arith.truncf %4 : vector<128x128xf32> to vector<128x128xbf16>
    %cst = arith.constant 8.000000e-01 : f32
    %6 = vector.broadcast %cst : f32 to vector<128x128xf32>
    %7 = arith.mulf %6, %4 : vector<128x128xf32>
    %c0_i32_5 = arith.constant 0 : i32
    %c0_i32_6 = arith.constant 0 : i32
    %c0_i32_7 = arith.constant 0 : i32
    %8 = tpu.memref_slice %arg1[%c0_i32_6, %c0_i32_7] : memref<128x128xbf16, #tpu.memory_space<any>> -> memref<128x128xbf16, #tpu.memory_space<any>>
    %c0_i32_8 = arith.constant 0 : i32
    %c0_i32_9 = arith.constant 0 : i32
    %9 = tpu.memref_slice %arg3[%c0_i32_8, %c0_i32_9] : memref<128x128xbf16, #tpu.memory_space<vmem>> -> memref<128x128xbf16, #tpu.memory_space<vmem>>
    %10 = tpu.memref_slice %arg4[%c0_i32_5] : memref<1x!tpu.dma_semaphore, #tpu.memory_space<semaphore_mem>> -> memref<1x!tpu.dma_semaphore, #tpu.memory_space<semaphore_mem>>
    %11 = tpu.memref_squeeze %10 : memref<1x!tpu.dma_semaphore, #tpu.memory_space<semaphore_mem>> -> memref<!tpu.dma_semaphore, #tpu.memory_space<semaphore_mem>>
    tpu.wait_dma2 semaphore(%11 : memref<!tpu.dma_semaphore, #tpu.memory_space<semaphore_mem>>) src(%8 : memref<128x128xbf16, #tpu.memory_space<any>>) dst(%9 : memref<128x128xbf16, #tpu.memory_space<vmem>>)
    %c0_10 = arith.constant 0 : index
    %c0_11 = arith.constant 0 : index
    %12 = vector.load %arg3[%c0_10, %c0_11] : memref<128x128xbf16, #tpu.memory_space<vmem>>, vector<128x128xbf16>
    %cst_12 = arith.constant dense<0.000000e+00> : vector<128x128xf32>
    %13 = tpu.matmul %12, %5, %cst_12 {dimension_numbers = #tpu.dot_dimension_numbers<[1], [0], [0], [1], [0, 0, 1, 1], [], []>} : vector<128x128xbf16>, vector<128x128xbf16>, vector<128x128xf32> -> vector<128x128xf32>
    %cst_13 = arith.constant 2.000000e-01 : f32
    %14 = vector.broadcast %cst_13 : f32 to vector<128x128xf32>
    %15 = arith.mulf %14, %13 : vector<128x128xf32>
    %16 = arith.addf %15, %7 : vector<128x128xf32>
    %c0_14 = arith.constant 0 : index
    %c0_15 = arith.constant 0 : index
    %17 = vector.load %arg2[%c0_14, %c0_15] : memref<128x128xf32, #tpu.memory_space<vmem>>, vector<128x128xf32>
    tpu.vector_store %arg2[%c0_14, %c0_15], %16 {strides = array<i32>} : memref<128x128xf32, #tpu.memory_space<vmem>>, vector<128x128xf32>,
    %c0_16 = arith.constant 0 : index
    %c0_17 = arith.constant 0 : index
    %18 = vector.load %arg3[%c0_16, %c0_17] : memref<128x128xbf16, #tpu.memory_space<vmem>>, vector<128x128xbf16>
    %c0_18 = arith.constant 0 : index
    %c0_19 = arith.constant 0 : index
    %19 = vector.load %arg2[%c0_18, %c0_19] : memref<128x128xf32, #tpu.memory_space<vmem>>, vector<128x128xf32>
    %20 = arith.truncf %19 : vector<128x128xf32> to vector<128x128xbf16>
    %cst_20 = arith.constant dense<0.000000e+00> : vector<128x128xf32>
    %21 = tpu.matmul %18, %20, %cst_20 {dimension_numbers = #tpu.dot_dimension_numbers<[1], [0], [0], [1], [0, 0, 1, 1], [], []>} : vector<128x128xbf16>, vector<128x128xbf16>, vector<128x128xf32> -> vector<128x128xf32>
    %cst_21 = arith.constant 2.000000e-01 : f32
    %22 = vector.broadcast %cst_21 : f32 to vector<128x128xf32>
    %23 = arith.mulf %22, %21 : vector<128x128xf32>
    %24 = arith.addf %23, %7 : vector<128x128xf32>
    %c0_22 = arith.constant 0 : index
    %c0_23 = arith.constant 0 : index
    %25 = vector.load %arg2[%c0_22, %c0_23] : memref<128x128xf32, #tpu.memory_space<vmem>>, vector<128x128xf32>
    tpu.vector_store %arg2[%c0_22, %c0_23], %24 {strides = array<i32>} : memref<128x128xf32, #tpu.memory_space<vmem>>, vector<128x128xf32>,
    %c0_24 = arith.constant 0 : index
    %c0_25 = arith.constant 0 : index
    %26 = vector.load %arg3[%c0_24, %c0_25] : memref<128x128xbf16, #tpu.memory_space<vmem>>, vector<128x128xbf16>
    %c0_26 = arith.constant 0 : index
    %c0_27 = arith.constant 0 : index
    %27 = vector.load %arg2[%c0_26, %c0_27] : memref<128x128xf32, #tpu.memory_space<vmem>>, vector<128x128xf32>
    %28 = arith.truncf %27 : vector<128x128xf32> to vector<128x128xbf16>
    %cst_28 = arith.constant dense<0.000000e+00> : vector<128x128xf32>
    %29 = tpu.matmul %26, %28, %cst_28 {dimension_numbers = #tpu.dot_dimension_numbers<[1], [0], [0], [1], [0, 0, 1, 1], [], []>} : vector<128x128xbf16>, vector<128x128xbf16>, vector<128x128xf32> -> vector<128x128xf32>
    %cst_29 = arith.constant 2.000000e-01 : f32
    %30 = vector.broadcast %cst_29 : f32 to vector<128x128xf32>
    %31 = arith.mulf %30, %29 : vector<128x128xf32>
    %32 = arith.addf %31, %7 : vector<128x128xf32>
    %c0_30 = arith.constant 0 : index
    %c0_31 = arith.constant 0 : index
    %33 = vector.load %arg2[%c0_30, %c0_31] : memref<128x128xf32, #tpu.memory_space<vmem>>, vector<128x128xf32>
    tpu.vector_store %arg2[%c0_30, %c0_31], %32 {strides = array<i32>} : memref<128x128xf32, #tpu.memory_space<vmem>>, vector<128x128xf32>,
    %c0_32 = arith.constant 0 : index
    %c0_33 = arith.constant 0 : index
    %34 = vector.load %arg3[%c0_32, %c0_33] : memref<128x128xbf16, #tpu.memory_space<vmem>>, vector<128x128xbf16>
    %c0_34 = arith.constant 0 : index
    %c0_35 = arith.constant 0 : index
    %35 = vector.load %arg2[%c0_34, %c0_35] : memref<128x128xf32, #tpu.memory_space<vmem>>, vector<128x128xf32>
    %36 = arith.truncf %35 : vector<128x128xf32> to vector<128x128xbf16>
    %cst_36 = arith.constant dense<0.000000e+00> : vector<128x128xf32>
    %37 = tpu.matmul %34, %36, %cst_36 {dimension_numbers = #tpu.dot_dimension_numbers<[1], [0], [0], [1], [0, 0, 1, 1], [], []>} : vector<128x128xbf16>, vector<128x128xbf16>, vector<128x128xf32> -> vector<128x128xf32>
    %cst_37 = arith.constant 2.000000e-01 : f32
    %38 = vector.broadcast %cst_37 : f32 to vector<128x128xf32>
    %39 = arith.mulf %38, %37 : vector<128x128xf32>
    %40 = arith.addf %39, %7 : vector<128x128xf32>
    %c0_38 = arith.constant 0 : index
    %c0_39 = arith.constant 0 : index
    %41 = vector.load %arg2[%c0_38, %c0_39] : memref<128x128xf32, #tpu.memory_space<vmem>>, vector<128x128xf32>
    tpu.vector_store %arg2[%c0_38, %c0_39], %40 {strides = array<i32>} : memref<128x128xf32, #tpu.memory_space<vmem>>, vector<128x128xf32>,
    %c0_40 = arith.constant 0 : index
    %c0_41 = arith.constant 0 : index
    %42 = vector.load %arg3[%c0_40, %c0_41] : memref<128x128xbf16, #tpu.memory_space<vmem>>, vector<128x128xbf16>
    %c0_42 = arith.constant 0 : index
    %c0_43 = arith.constant 0 : index
    %43 = vector.load %arg2[%c0_42, %c0_43] : memref<128x128xf32, #tpu.memory_space<vmem>>, vector<128x128xf32>
    %44 = arith.truncf %43 : vector<128x128xf32> to vector<128x128xbf16>
    %cst_44 = arith.constant dense<0.000000e+00> : vector<128x128xf32>
    %45 = tpu.matmul %42, %44, %cst_44 {dimension_numbers = #tpu.dot_dimension_numbers<[1], [0], [0], [1], [0, 0, 1, 1], [], []>} : vector<128x128xbf16>, vector<128x128xbf16>, vector<128x128xf32> -> vector<128x128xf32>
    %cst_45 = arith.constant 2.000000e-01 : f32
    %46 = vector.broadcast %cst_45 : f32 to vector<128x128xf32>
    %47 = arith.mulf %46, %45 : vector<128x128xf32>
    %48 = arith.addf %47, %7 : vector<128x128xf32>
    %c0_46 = arith.constant 0 : index
    %c0_47 = arith.constant 0 : index
    %49 = vector.load %arg2[%c0_46, %c0_47] : memref<128x128xf32, #tpu.memory_space<vmem>>, vector<128x128xf32>
    tpu.vector_store %arg2[%c0_46, %c0_47], %48 {strides = array<i32>} : memref<128x128xf32, #tpu.memory_space<vmem>>, vector<128x128xf32>,
    return
  }
}

</mosaic_0001>

<bundles_post_ra>
// kernel: tpu_custom_call.1
= control target key start
LH: loop header
LB: loop body
LE: loop exit
PB: predicated region body
PF: predicated region fallthrough
CT: control target
= control target key end

     0   :  { %7 = vsyncpa [#allocation5], 0  ;;  %s1528_s0 = inlined_call_operand.hbm [shape: f32[128,128], index: 0, kind: input, shape index: {}]   ;;  %s1529_s1 = inlined_call_operand.hbm [shape: bf16[128,128], index: 1, kind: input, shape index: {}]   ;;  %s1530_s2 = inlined_call_operand.hbm [shape: f32[128,128], index: 2, kind: output, shape index: {}]  }
   0x1   :  { %8 = vsyncpa [#allocation6], 0  ;;  %s1298_s9 = smov [#allocation4]   ;;  %s1226_s13 = scalar_lea.hbm %s1528_s0, 2048 }
   0x2   :  { %s14_s10 = sshll.u32 %s1298_s9, 4  ;;  %p1227_p0 = scmp.ne.s32.totalorder %s1528_s0, %s1226_s13  ;;  %s15_s10 = int_to_ptr.vmem [resolvable:$true] %s14_s10 }
   0x3   :  { %p1230_p1 = scmp.lt.u32.totalorder %s1226_s13, %s1528_s0 }
   0x5   :  { %p1232_p2 = pnand %p1230_p1, %p1227_p0 }
   0x7   :  { %1235 = shalt.err (!%p1232_p2)
}
   0x8   :  { %s1236_s18 = scalar_lea.vmem %s15_s10, 2048  ;;  %p1241_p4 = scmp.lt.s32.totalorder %s15_s10, %s15_s10 }
   0x9   :  { %p1237_p3 = scmp.ne.s32.totalorder %s15_s10, %s1236_s18  ;;  %p1242_p5 = scmp.lt.s32.totalorder %s1236_s18, %s1236_s18 }
   0xb   :  { %p1243_p6 = por %p1242_p5, %p1241_p4 }
   0xd   :  { %p1244_p7 = pnand %p1243_p6, %p1237_p3 }
   0xf   :  { %1247 = shalt.err (!%p1244_p7)
}
  0x10   :  { %s1299_s19 = smov 128   ;;  %s1300_s20 = smov 8  }
  0x11   :  { %20 = dma.hbm_to_vmem [thread:$0]  %s1528_s0, 2048, %s15_s10, [#allocation5], %s1299_s19, %s1299_s19, %s1300_s20  }
  0x12   :  { %1292 = dma.done.wait [#allocation5], 2048  }
  0x13   :  { %1293 = vsyncadd [#allocation5], 4294965248  ;;  %s1301_s23 = smov [#allocation2]   ;;  %s1248_s27 = scalar_lea.hbm %s1529_s1, 1024 }
  0x14   :  { %s32_s24 = sshll.u32 %s1301_s23, 4  ;;  %p1249_p8 = scmp.ne.s32.totalorder %s1529_s1, %s1248_s27  ;;  %s33_s24 = int_to_ptr.vmem [resolvable:$true] %s32_s24 }
  0x15   :  { %p1252_p9 = scmp.lt.u32.totalorder %s1248_s27, %s1529_s1 }
  0x17   :  { %p1254_p10 = pnand %p1252_p9, %p1249_p8 }
  0x19   :  { %1257 = shalt.err (!%p1254_p10)  }
  0x1a   :  { %s1258_s0 = scalar_lea.vmem %s33_s24, 1024  ;;  %p1263_p12 = scmp.lt.s32.totalorder %s33_s24, %s33_s24 }
  0x1b   :  { %p1259_p11 = scmp.ne.s32.totalorder %s33_s24, %s1258_s0  ;;  %p1264_p13 = scmp.lt.s32.totalorder %s1258_s0, %s1258_s0 }
  0x1d   :  { %p1265_p0 = por %p1264_p13, %p1263_p12 }
  0x1f   :  { %p1266_p1 = pnand %p1265_p0, %p1259_p11 }
  0x21   :  { %1269 = shalt.err (!%p1266_p1)  }
  0x22   :  { %35 = dma.hbm_to_vmem [thread:$0]  %s1529_s1, 1024, %s33_s24, [#allocation3]  ;;  %v36_v0 = vld [vmem:[#allocation4] sm:$0xff]  ;;  %v37_v1 = vld [vmem:[#allocation4 + $0x8] sm:$0xff]  ;;  %v38_v2 = vld [vmem:[#allocation4 + $0x10] sm:$0xff] }
  0x23   :  { %v39_v3 = vld [vmem:[#allocation4 + $0x18] sm:$0xff]  ;;  %v40_v4 = vld [vmem:[#allocation4 + $0x20] sm:$0xff]  ;;  %v41_v5 = vld [vmem:[#allocation4 + $0x28] sm:$0xff]  ;;  %v52_v6 = vpack.c.bf16 %v37_v1, %v36_v0  ;;  %v1345_v7 = vmul.f32 0.8, %v36_v0 }
  0x24   :  { %v42_v8 = vld [vmem:[#allocation4 + $0x30] sm:$0xff]  ;;  %v43_v9 = vld [vmem:[#allocation4 + $0x38] sm:$0xff]  ;;  %v44_v10 = vld [vmem:[#allocation4 + $0x40] sm:$0xff]  ;;  %v53_v11 = vpack.c.bf16 %v39_v3, %v38_v2  ;;  %v54_v12 = vpack.c.bf16 %v41_v5, %v40_v4  ;;  %v1347_v13 = vmul.f32 0.8, %v37_v1 }
  0x25   :  { %v45_v14 = vld [vmem:[#allocation4 + $0x48] sm:$0xff]  ;;  %v46_v15 = vld [vmem:[#allocation4 + $0x50] sm:$0xff]  ;;  %v47_v16 = vld [vmem:[#allocation4 + $0x58] sm:$0xff]  ;;  %v55_v17 = vpack.c.bf16 %v43_v9, %v42_v8  ;;  %v1349_v18 = vmul.f32 0.8, %v38_v2  ;;  %1045 = vmatprep.subr.bf16.mxu0 %v52_v6 }
  0x26   :  { %v48_v19 = vld [vmem:[#allocation4 + $0x60] sm:$0xff]  ;;  %v49_v20 = vld [vmem:[#allocation4 + $0x68] sm:$0xff]  ;;  %v50_v21 = vld [vmem:[#allocation4 + $0x70] sm:$0xff]  ;;  %v56_v22 = vpack.c.bf16 %v45_v14, %v44_v10  ;;  %v57_v23 = vpack.c.bf16 %v47_v16, %v46_v15  ;;  %v1351_v24 = vmul.f32 0.8, %v39_v3 }
  0x27   :  { %v51_v25 = vld [vmem:[#allocation4 + $0x78] sm:$0xff]  ;;  %v58_v26 = vpack.c.bf16 %v49_v20, %v48_v19  ;;  %v1353_v27 = vmul.f32 0.8, %v40_v4  ;;  %v1355_v28 = vmul.f32 0.8, %v41_v5 }
  0x28   :  { %v59_v29 = vpack.c.bf16 %v51_v25, %v50_v21  ;;  %v1357_v30 = vmul.f32 0.8, %v42_v8  ;;  %v1359_v31 = vmul.f32 0.8, %v43_v9  ;;  %v1361_v32 = vmul.f32 0.8, %v44_v10 }
  0x29   :  { %v1363_v33 = vmul.f32 0.8, %v45_v14  ;;  %v1365_v34 = vmul.f32 0.8, %v46_v15  ;;  %v1367_v35 = vmul.f32 0.8, %v47_v16 }
  0x2a   :  { %v1369_v36 = vmul.f32 0.8, %v48_v19  ;;  %v1371_v37 = vmul.f32 0.8, %v49_v20  ;;  %v1373_v38 = vmul.f32 0.8, %v50_v21 }
  0x2b   :  { %v1375_v39 = vmul.f32 0.8, %v51_v25 }
  0x2c   :  { %1294 = dma.done.wait [#allocation3], 1024 }
  0x2d   :  { %1295 = vsyncadd [#allocation3], 4294966272  ;;  %1046 = vmatpush3.bf16.msra.mxu0 %v52_v6  ;;  %v1377_v40 = vld [vmem:[#allocation2] sm:$0xff]  ;;  %v1381_v41 = vld [vmem:[#allocation2 + $0x8] sm:$0xff]  ;;  %s1302_s1 = smov [#allocation7]  }
  0x2e   :  { %1047 = vmatprep.subr.bf16.mxu0 %v53_v11  ;;  %1061 = vmatprep.mubr.bf16.mxu0 %v1377_v40  ;;  %v1383_v42 = vld [vmem:[#allocation2 + $0x10] sm:$0xff]  ;;  %v1387_v43 = vld [vmem:[#allocation2 + $0x18] sm:$0xff]  ;;  %v1389_v44 = vld [vmem:[#allocation2 + $0x20] sm:$0xff]  ;;  %s946_s6 = sshll.u32 %s1302_s1, 4  ;;  %s947_s6 = int_to_ptr.vmem [resolvable:$true] %s946_s6 }
  0x2f   :  { %1093 = vmatprep.mubr.bf16.mxu1 %v1377_v40  ;;  %v1393_v45 = vld [vmem:[#allocation2 + $0x28] sm:$0xff]  ;;  %v1395_v46 = vld [vmem:[#allocation2 + $0x30] sm:$0xff]  ;;  %v1399_v47 = vld [vmem:[#allocation2 + $0x38] sm:$0xff]  ;;  %s1270_s7 = scalar_lea.vmem %s947_s6, 2048  ;;  %p1275_p3 = scmp.lt.s32.totalorder %s947_s6, %s947_s6 }
  0x30   :  { %p1271_p2 = scmp.ne.s32.totalorder %s947_s6, %s1270_s7  ;;  %p1276_p4 = scmp.lt.s32.totalorder %s1270_s7, %s1270_s7 }
  0x31   :  { %1048 = vmatpush3.bf16.msra.mxu0 %v53_v11 }
  0x32   :  { %1049 = vmatprep.subr.bf16.mxu0 %v54_v12  ;;  %p1277_p5 = por %p1276_p4, %p1275_p3 }
  0x34   :  { %p1278_p6 = pnand %p1277_p5, %p1271_p2 }
  0x35   :  { %1050 = vmatpush3.bf16.msra.mxu0 %v54_v12 }
  0x36   :  { %1051 = vmatprep.subr.bf16.mxu0 %v55_v17 }
  0x39   :  { %1052 = vmatpush3.bf16.msra.mxu0 %v55_v17 }
  0x3a   :  { %1053 = vmatprep.subr.bf16.mxu0 %v56_v22 }
  0x3d   :  { %1054 = vmatpush3.bf16.msra.mxu0 %v56_v22 }
  0x3e   :  { %1055 = vmatprep.subr.bf16.mxu0 %v57_v23 }
  0x41   :  { %1056 = vmatpush3.bf16.msra.mxu0 %v57_v23 }
  0x42   :  { %1057 = vmatprep.subr.bf16.mxu0 %v58_v26 }
  0x45   :  { %1058 = vmatpush3.bf16.msra.mxu0 %v58_v26 }
  0x46   :  { %1059 = vmatprep.subr.bf16.mxu0 %v59_v29 }
  0x49   :  { %1060 = vmatpush3.bf16.msra.mxu0 %v59_v29 }
  0x4c   :  { %1062 = vmatmul.mubr.bf16.vlgmr.msra.gmra.mrb[0].mxu0 %v1381_v41 }
  0x4d   :  { %1065 = vmatprep.mubr.bf16.mxu0 %v1383_v42 }
  0x54   :  { %1066 = vmatmul.mubr.bf16.gmra.mrb[4].mxu0 %v1387_v43 }
  0x55   :  { %1069 = vmatprep.mubr.bf16.mxu0 %v1389_v44 }
  0x5c   :  { %1070 = vmatmul.mubr.bf16.gmra.mrb[8].mxu0 %v1393_v45 }
  0x5d   :  { %1073 = vmatprep.mubr.bf16.mxu0 %v1395_v46 }
  0x64   :  { %1074 = vmatmul.mubr.bf16.gmra.mrb[12].mxu0 %v1399_v47 }
  0x65   :  { %1125 = vmatprep.mubr.bf16.mxu0 %v1377_v40 }
 0x11f   :  { %v1063_v48 = vpop.f32.mrb[0].mxu0 }
 0x120   :  { %v187_v49 = vmul.f32 0.2, %v1063_v48  ;;  %v122_v50 = vpop.f32.mrb[1].mxu0 }
 0x121   :  { %v185_v51 = vmul.f32 0.2, %v122_v50  ;;  %v1064_v52 = vpop.f32.mrb[2].mxu0 }
 0x122   :  { %v188_v53 = vmul.f32 0.2, %v1064_v52  ;;  %v125_v54 = vpop.f32.mrb[3].mxu0  ;;  %v203_v56 = vadd.f32 %v187_v49, %v1349_v18 }
 0x123   :  { %v186_v55 = vmul.f32 0.2, %v125_v54  ;;  %v201_v58 = vadd.f32 %v185_v51, %v1345_v7 }
 0x124   :  { %v204_v57 = vadd.f32 %v188_v53, %v1351_v24 }
 0x125   :  { %v202_v59 = vadd.f32 %v186_v55, %v1347_v13 }
 0x126   :  { %v258_v60 = vpack.c.bf16 %v204_v57, %v203_v56 }
 0x127   :  { %v1067_v61 = vpop.f32.mrb[4].mxu0  ;;  %v257_v62 = vpack.c.bf16 %v202_v59, %v201_v58 }
 0x128   :  { %v191_v63 = vmul.f32 0.2, %v1067_v61  ;;  %v138_v0 = vpop.f32.mrb[5].mxu0 }
 0x129   :  { %v189_v1 = vmul.f32 0.2, %v138_v0  ;;  %v1068_v2 = vpop.f32.mrb[6].mxu0  ;;  %1077 = vmatprep.subr.bf16.mxu1 %v257_v62 }
 0x12a   :  { %v192_v3 = vmul.f32 0.2, %v1068_v2  ;;  %v141_v4 = vpop.f32.mrb[7].mxu0  ;;  %1078 = vmatpush3.bf16.msra.mxu1 %v257_v62  ;;  %v207_v6 = vadd.f32 %v191_v63, %v1357_v30 }
 0x12b   :  { %v190_v5 = vmul.f32 0.2, %v141_v4  ;;  %1079 = vmatprep.subr.bf16.mxu1 %v258_v60  ;;  %v205_v9 = vadd.f32 %v189_v1, %v1353_v27 }
 0x12c   :  { %v208_v8 = vadd.f32 %v192_v3, %v1359_v31 }
 0x12d   :  { %v206_v10 = vadd.f32 %v190_v5, %v1355_v28 }
 0x12e   :  { %1080 = vmatpush3.bf16.msra.mxu1 %v258_v60  ;;  %v260_v11 = vpack.c.bf16 %v208_v8, %v207_v6 }
 0x12f   :  { %v1071_v12 = vpop.f32.mrb[8].mxu0  ;;  %v259_v14 = vpack.c.bf16 %v206_v10, %v205_v9 }
 0x130   :  { %v195_v15 = vmul.f32 0.2, %v1071_v12  ;;  %v154_v16 = vpop.f32.mrb[9].mxu0 }
 0x131   :  { %v193_v17 = vmul.f32 0.2, %v154_v16  ;;  %v1072_v19 = vpop.f32.mrb[10].mxu0  ;;  %1081 = vmatprep.subr.bf16.mxu1 %v259_v14 }
 0x132   :  { %v196_v20 = vmul.f32 0.2, %v1072_v19  ;;  %v157_v21 = vpop.f32.mrb[11].mxu0  ;;  %1082 = vmatpush3.bf16.msra.mxu1 %v259_v14  ;;  %v211_v23 = vadd.f32 %v195_v15, %v1365_v34 }
 0x133   :  { %v194_v22 = vmul.f32 0.2, %v157_v21  ;;  %1083 = vmatprep.subr.bf16.mxu1 %v260_v11  ;;  %v209_v26 = vadd.f32 %v193_v17, %v1361_v32 }
 0x134   :  { %v212_v25 = vadd.f32 %v196_v20, %v1367_v35 }
 0x135   :  { %v210_v29 = vadd.f32 %v194_v22, %v1363_v33 }
 0x136   :  { %1084 = vmatpush3.bf16.msra.mxu1 %v260_v11  ;;  %v262_v48 = vpack.c.bf16 %v212_v25, %v211_v23 }
 0x137   :  { %v1075_v49 = vpop.f32.mrb[12].mxu0  ;;  %v261_v50 = vpack.c.bf16 %v210_v29, %v209_v26 }
 0x138   :  { %v199_v51 = vmul.f32 0.2, %v1075_v49  ;;  %v170_v52 = vpop.f32.mrb[13].mxu0 }
 0x139   :  { %v197_v53 = vmul.f32 0.2, %v170_v52  ;;  %v1076_v54 = vpop.f32.mrb[14].mxu0  ;;  %1085 = vmatprep.subr.bf16.mxu1 %v261_v50 }
 0x13a   :  { %v200_v55 = vmul.f32 0.2, %v1076_v54  ;;  %v173_v56 = vpop.f32.mrb[15].mxu0  ;;  %1086 = vmatpush3.bf16.msra.mxu1 %v261_v50  ;;  %v215_v58 = vadd.f32 %v199_v51, %v1373_v38 }
 0x13b   :  { %v198_v57 = vmul.f32 0.2, %v173_v56  ;;  %1087 = vmatprep.subr.bf16.mxu1 %v262_v48  ;;  %v213_v60 = vadd.f32 %v197_v53, %v1369_v36 }
 0x13c   :  { %v216_v59 = vadd.f32 %v200_v55, %v1375_v39 }
 0x13d   :  { %v214_v61 = vadd.f32 %v198_v57, %v1371_v37 }
 0x13e   :  { %1088 = vmatpush3.bf16.msra.mxu1 %v262_v48  ;;  %v264_v62 = vpack.c.bf16 %v216_v59, %v215_v58 }
 0x13f   :  { %v263_v63 = vpack.c.bf16 %v214_v61, %v213_v60 }
 0x141   :  { %1089 = vmatprep.subr.bf16.mxu1 %v263_v63 }
 0x142   :  { %1090 = vmatpush3.bf16.msra.mxu1 %v263_v63 }
 0x143   :  { %1091 = vmatprep.subr.bf16.mxu1 %v264_v62 }
 0x146   :  { %1092 = vmatpush3.bf16.msra.mxu1 %v264_v62 }
 0x149   :  { %1094 = vmatmul.mubr.bf16.vlgmr.msra.gmra.mrb[0].mxu1 %v1381_v41 }
 0x14a   :  { %1097 = vmatprep.mubr.bf16.mxu1 %v1383_v42 }
 0x151   :  { %1098 = vmatmul.mubr.bf16.gmra.mrb[4].mxu1 %v1387_v43 }
 0x152   :  { %1101 = vmatprep.mubr.bf16.mxu1 %v1389_v44 }
 0x159   :  { %1102 = vmatmul.mubr.bf16.gmra.mrb[8].mxu1 %v1393_v45 }
 0x15a   :  { %1105 = vmatprep.mubr.bf16.mxu1 %v1395_v46 }
 0x161   :  { %1106 = vmatmul.mubr.bf16.gmra.mrb[12].mxu1 %v1399_v47 }
 0x162   :  { %1157 = vmatprep.mubr.bf16.mxu1 %v1377_v40 }
 0x21c   :  { %v1095_v0 = vpop.f32.mrb[0].mxu1 }
 0x21d   :  { %v364_v1 = vmul.f32 0.2, %v1095_v0  ;;  %v299_v2 = vpop.f32.mrb[1].mxu1 }
 0x21e   :  { %v362_v3 = vmul.f32 0.2, %v299_v2  ;;  %v1096_v4 = vpop.f32.mrb[2].mxu1 }
 0x21f   :  { %v365_v5 = vmul.f32 0.2, %v1096_v4  ;;  %v302_v6 = vpop.f32.mrb[3].mxu1  ;;  %v380_v9 = vadd.f32 %v364_v1, %v1349_v18 }
 0x220   :  { %v363_v8 = vmul.f32 0.2, %v302_v6  ;;  %v378_v11 = vadd.f32 %v362_v3, %v1345_v7 }
 0x221   :  { %v381_v10 = vadd.f32 %v365_v5, %v1351_v24 }
 0x222   :  { %v379_v12 = vadd.f32 %v363_v8, %v1347_v13 }
 0x223   :  { %v435_v14 = vpack.c.bf16 %v381_v10, %v380_v9 }
 0x224   :  { %v1099_v15 = vpop.f32.mrb[4].mxu1  ;;  %v434_v16 = vpack.c.bf16 %v379_v12, %v378_v11 }
 0x225   :  { %v368_v17 = vmul.f32 0.2, %v1099_v15  ;;  %v315_v19 = vpop.f32.mrb[5].mxu1 }
 0x226   :  { %v366_v20 = vmul.f32 0.2, %v315_v19  ;;  %v1100_v21 = vpop.f32.mrb[6].mxu1  ;;  %1109 = vmatprep.subr.bf16.mxu0 %v434_v16 }
 0x227   :  { %v369_v22 = vmul.f32 0.2, %v1100_v21  ;;  %v318_v23 = vpop.f32.mrb[7].mxu1  ;;  %1110 = vmatpush3.bf16.msra.mxu0 %v434_v16  ;;  %v384_v26 = vadd.f32 %v368_v17, %v1357_v30 }
 0x228   :  { %v367_v25 = vmul.f32 0.2, %v318_v23  ;;  %1111 = vmatprep.subr.bf16.mxu0 %v435_v14  ;;  %v382_v48 = vadd.f32 %v366_v20, %v1353_v27 }
 0x229   :  { %v385_v29 = vadd.f32 %v369_v22, %v1359_v31 }
 0x22a   :  { %v383_v49 = vadd.f32 %v367_v25, %v1355_v28 }
 0x22b   :  { %1112 = vmatpush3.bf16.msra.mxu0 %v435_v14  ;;  %v437_v50 = vpack.c.bf16 %v385_v29, %v384_v26 }
 0x22c   :  { %v1103_v51 = vpop.f32.mrb[8].mxu1  ;;  %v436_v52 = vpack.c.bf16 %v383_v49, %v382_v48 }
 0x22d   :  { %v372_v53 = vmul.f32 0.2, %v1103_v51  ;;  %v331_v54 = vpop.f32.mrb[9].mxu1 }
 0x22e   :  { %v370_v55 = vmul.f32 0.2, %v331_v54  ;;  %v1104_v56 = vpop.f32.mrb[10].mxu1  ;;  %1113 = vmatprep.subr.bf16.mxu0 %v436_v52 }
 0x22f   :  { %v373_v57 = vmul.f32 0.2, %v1104_v56  ;;  %v334_v58 = vpop.f32.mrb[11].mxu1  ;;  %1114 = vmatpush3.bf16.msra.mxu0 %v436_v52  ;;  %v388_v60 = vadd.f32 %v372_v53, %v1365_v34 }
 0x230   :  { %v371_v59 = vmul.f32 0.2, %v334_v58  ;;  %1115 = vmatprep.subr.bf16.mxu0 %v437_v50  ;;  %v386_v62 = vadd.f32 %v370_v55, %v1361_v32 }
 0x231   :  { %v389_v61 = vadd.f32 %v373_v57, %v1367_v35 }
 0x232   :  { %v387_v63 = vadd.f32 %v371_v59, %v1363_v33 }
 0x233   :  { %1116 = vmatpush3.bf16.msra.mxu0 %v437_v50  ;;  %v439_v0 = vpack.c.bf16 %v389_v61, %v388_v60 }
 0x234   :  { %v1107_v1 = vpop.f32.mrb[12].mxu1  ;;  %v438_v2 = vpack.c.bf16 %v387_v63, %v386_v62 }
 0x235   :  { %v376_v3 = vmul.f32 0.2, %v1107_v1  ;;  %v347_v4 = vpop.f32.mrb[13].mxu1 }
 0x236   :  { %v374_v5 = vmul.f32 0.2, %v347_v4  ;;  %v1108_v6 = vpop.f32.mrb[14].mxu1  ;;  %1117 = vmatprep.subr.bf16.mxu0 %v438_v2 }
 0x237   :  { %v377_v8 = vmul.f32 0.2, %v1108_v6  ;;  %v350_v9 = vpop.f32.mrb[15].mxu1  ;;  %1118 = vmatpush3.bf16.msra.mxu0 %v438_v2  ;;  %v392_v11 = vadd.f32 %v376_v3, %v1373_v38 }
 0x238   :  { %v375_v10 = vmul.f32 0.2, %v350_v9  ;;  %1119 = vmatprep.subr.bf16.mxu0 %v439_v0  ;;  %v390_v14 = vadd.f32 %v374_v5, %v1369_v36 }
 0x239   :  { %v393_v12 = vadd.f32 %v377_v8, %v1375_v39 }
 0x23a   :  { %v391_v15 = vadd.f32 %v375_v10, %v1371_v37 }
 0x23b   :  { %1120 = vmatpush3.bf16.msra.mxu0 %v439_v0  ;;  %v441_v16 = vpack.c.bf16 %v393_v12, %v392_v11 }
 0x23c   :  { %v440_v17 = vpack.c.bf16 %v391_v15, %v390_v14 }
 0x23e   :  { %1121 = vmatprep.subr.bf16.mxu0 %v440_v17 }
 0x23f   :  { %1122 = vmatpush3.bf16.msra.mxu0 %v440_v17 }
 0x240   :  { %1123 = vmatprep.subr.bf16.mxu0 %v441_v16 }
 0x243   :  { %1124 = vmatpush3.bf16.msra.mxu0 %v441_v16 }
 0x246   :  { %1126 = vmatmul.mubr.bf16.vlgmr.msra.gmra.mrb[16].mxu0 %v1381_v41 }
 0x247   :  { %1129 = vmatprep.mubr.bf16.mxu0 %v1383_v42 }
 0x24e   :  { %1130 = vmatmul.mubr.bf16.gmra.mrb[20].mxu0 %v1387_v43 }
 0x24f   :  { %1133 = vmatprep.mubr.bf16.mxu0 %v1389_v44 }
 0x256   :  { %1134 = vmatmul.mubr.bf16.gmra.mrb[24].mxu0 %v1393_v45 }
 0x257   :  { %1137 = vmatprep.mubr.bf16.mxu0 %v1395_v46 }
 0x25e   :  { %1138 = vmatmul.mubr.bf16.gmra.mrb[28].mxu0 %v1399_v47 }
 0x25f   :  { %1189 = vmatprep.mubr.bf16.mxu0 %v1377_v40 }
 0x319   :  { %v1127_v19 = vpop.f32.mrb[16].mxu0 }
 0x31a   :  { %v541_v20 = vmul.f32 0.2, %v1127_v19  ;;  %v476_v21 = vpop.f32.mrb[17].mxu0 }
 0x31b   :  { %v539_v22 = vmul.f32 0.2, %v476_v21  ;;  %v1128_v23 = vpop.f32.mrb[18].mxu0 }
 0x31c   :  { %v542_v25 = vmul.f32 0.2, %v1128_v23  ;;  %v479_v26 = vpop.f32.mrb[19].mxu0  ;;  %v557_v48 = vadd.f32 %v541_v20, %v1349_v18 }
 0x31d   :  { %v540_v29 = vmul.f32 0.2, %v479_v26  ;;  %v555_v50 = vadd.f32 %v539_v22, %v1345_v7 }
 0x31e   :  { %v558_v49 = vadd.f32 %v542_v25, %v1351_v24 }
 0x31f   :  { %v556_v51 = vadd.f32 %v540_v29, %v1347_v13 }
 0x320   :  { %v612_v52 = vpack.c.bf16 %v558_v49, %v557_v48 }
 0x321   :  { %v1131_v53 = vpop.f32.mrb[20].mxu0  ;;  %v611_v54 = vpack.c.bf16 %v556_v51, %v555_v50 }
 0x322   :  { %v545_v40 = vmul.f32 0.2, %v1131_v53  ;;  %v492_v55 = vpop.f32.mrb[21].mxu0 }
 0x323   :  { %v543_v56 = vmul.f32 0.2, %v492_v55  ;;  %v1132_v57 = vpop.f32.mrb[22].mxu0  ;;  %1141 = vmatprep.subr.bf16.mxu1 %v611_v54 }
 0x324   :  { %v546_v58 = vmul.f32 0.2, %v1132_v57  ;;  %v495_v59 = vpop.f32.mrb[23].mxu0  ;;  %1142 = vmatpush3.bf16.msra.mxu1 %v611_v54  ;;  %v561_v61 = vadd.f32 %v545_v40, %v1357_v30 }
 0x325   :  { %v544_v60 = vmul.f32 0.2, %v495_v59  ;;  %1143 = vmatprep.subr.bf16.mxu1 %v612_v52  ;;  %v559_v63 = vadd.f32 %v543_v56, %v1353_v27 }
 0x326   :  { %v562_v62 = vadd.f32 %v546_v58, %v1359_v31 }
 0x327   :  { %v560_v0 = vadd.f32 %v544_v60, %v1355_v28 }
 0x328   :  { %1144 = vmatpush3.bf16.msra.mxu1 %v612_v52  ;;  %v614_v1 = vpack.c.bf16 %v562_v62, %v561_v61 }
 0x329   :  { %v1135_v2 = vpop.f32.mrb[24].mxu0  ;;  %v613_v3 = vpack.c.bf16 %v560_v0, %v559_v63 }
 0x32a   :  { %v549_v4 = vmul.f32 0.2, %v1135_v2  ;;  %v508_v5 = vpop.f32.mrb[25].mxu0 }
 0x32b   :  { %v547_v6 = vmul.f32 0.2, %v508_v5  ;;  %v1136_v8 = vpop.f32.mrb[26].mxu0  ;;  %1145 = vmatprep.subr.bf16.mxu1 %v613_v3 }
 0x32c   :  { %v550_v9 = vmul.f32 0.2, %v1136_v8  ;;  %v511_v10 = vpop.f32.mrb[27].mxu0  ;;  %1146 = vmatpush3.bf16.msra.mxu1 %v613_v3  ;;  %v565_v12 = vadd.f32 %v549_v4, %v1365_v34 }
 0x32d   :  { %v548_v11 = vmul.f32 0.2, %v511_v10  ;;  %1147 = vmatprep.subr.bf16.mxu1 %v614_v1  ;;  %v563_v15 = vadd.f32 %v547_v6, %v1361_v32 }
 0x32e   :  { %v566_v14 = vadd.f32 %v550_v9, %v1367_v35 }
 0x32f   :  { %v564_v16 = vadd.f32 %v548_v11, %v1363_v33 }
 0x330   :  { %1148 = vmatpush3.bf16.msra.mxu1 %v614_v1  ;;  %v616_v17 = vpack.c.bf16 %v566_v14, %v565_v12 }
 0x331   :  { %v1139_v19 = vpop.f32.mrb[28].mxu0  ;;  %v615_v20 = vpack.c.bf16 %v564_v16, %v563_v15 }
 0x332   :  { %v553_v21 = vmul.f32 0.2, %v1139_v19  ;;  %v524_v22 = vpop.f32.mrb[29].mxu0 }
 0x333   :  { %v551_v23 = vmul.f32 0.2, %v524_v22  ;;  %v1140_v25 = vpop.f32.mrb[30].mxu0  ;;  %1149 = vmatprep.subr.bf16.mxu1 %v615_v20 }
 0x334   :  { %v554_v26 = vmul.f32 0.2, %v1140_v25  ;;  %v527_v29 = vpop.f32.mrb[31].mxu0  ;;  %1150 = vmatpush3.bf16.msra.mxu1 %v615_v20  ;;  %v569_v49 = vadd.f32 %v553_v21, %v1373_v38 }
 0x335   :  { %v552_v48 = vmul.f32 0.2, %v527_v29  ;;  %1151 = vmatprep.subr.bf16.mxu1 %v616_v17  ;;  %v567_v51 = vadd.f32 %v551_v23, %v1369_v36 }
 0x336   :  { %v570_v50 = vadd.f32 %v554_v26, %v1375_v39 }
 0x337   :  { %v568_v52 = vadd.f32 %v552_v48, %v1371_v37 }
 0x338   :  { %1152 = vmatpush3.bf16.msra.mxu1 %v616_v17  ;;  %v618_v53 = vpack.c.bf16 %v570_v50, %v569_v49 }
 0x339   :  { %v617_v54 = vpack.c.bf16 %v568_v52, %v567_v51 }
 0x33b   :  { %1153 = vmatprep.subr.bf16.mxu1 %v617_v54 }
 0x33c   :  { %1154 = vmatpush3.bf16.msra.mxu1 %v617_v54 }
 0x33d   :  { %1155 = vmatprep.subr.bf16.mxu1 %v618_v53 }
 0x340   :  { %1156 = vmatpush3.bf16.msra.mxu1 %v618_v53 }
 0x343   :  { %1158 = vmatmul.mubr.bf16.vlgmr.msra.gmra.mrb[16].mxu1 %v1381_v41 }
 0x344   :  { %1161 = vmatprep.mubr.bf16.mxu1 %v1383_v42 }
 0x34b   :  { %1162 = vmatmul.mubr.bf16.gmra.mrb[20].mxu1 %v1387_v43 }
 0x34c   :  { %1165 = vmatprep.mubr.bf16.mxu1 %v1389_v44 }
 0x353   :  { %1166 = vmatmul.mubr.bf16.gmra.mrb[24].mxu1 %v1393_v45 }
 0x354   :  { %1169 = vmatprep.mubr.bf16.mxu1 %v1395_v46 }
 0x35b   :  { %1170 = vmatmul.mubr.bf16.gmra.mrb[28].mxu1 %v1399_v47 }
 0x35c   :  { %1197 = vmatprep.mubr.bf16.mxu1 %v1389_v44 }
 0x416   :  { %v1159_v40 = vpop.f32.mrb[16].mxu1 }
 0x417   :  { %v718_v55 = vmul.f32 0.2, %v1159_v40  ;;  %v653_v56 = vpop.f32.mrb[17].mxu1 }
 0x418   :  { %v716_v57 = vmul.f32 0.2, %v653_v56  ;;  %v1160_v58 = vpop.f32.mrb[18].mxu1 }
 0x419   :  { %v719_v59 = vmul.f32 0.2, %v1160_v58  ;;  %v656_v60 = vpop.f32.mrb[19].mxu1  ;;  %v734_v62 = vadd.f32 %v718_v55, %v1349_v18 }
 0x41a   :  { %v717_v61 = vmul.f32 0.2, %v656_v60  ;;  %v732_v0 = vadd.f32 %v716_v57, %v1345_v7 }
 0x41b   :  { %v735_v63 = vadd.f32 %v719_v59, %v1351_v24 }
 0x41c   :  { %v733_v1 = vadd.f32 %v717_v61, %v1347_v13 }
 0x41d   :  { %v789_v2 = vpack.c.bf16 %v735_v63, %v734_v62 }
 0x41e   :  { %v1163_v3 = vpop.f32.mrb[20].mxu1  ;;  %v788_v4 = vpack.c.bf16 %v733_v1, %v732_v0 }
 0x41f   :  { %v722_v44 = vmul.f32 0.2, %v1163_v3  ;;  %v669_v5 = vpop.f32.mrb[21].mxu1 }
 0x420   :  { %v720_v6 = vmul.f32 0.2, %v669_v5  ;;  %v1164_v8 = vpop.f32.mrb[22].mxu1  ;;  %1173 = vmatprep.subr.bf16.mxu0 %v788_v4  ;;  %1205 = vmatprep.subr.bf16.mxu1 %v788_v4 }
 0x421   :  { %v723_v9 = vmul.f32 0.2, %v1164_v8  ;;  %v672_v10 = vpop.f32.mrb[23].mxu1  ;;  %1174 = vmatpush3.bf16.msra.mxu0 %v788_v4  ;;  %1213 = vmatpush3.bf16.msra.mxu1 %v788_v4  ;;  %v738_v12 = vadd.f32 %v722_v44, %v1357_v30 }
 0x422   :  { %v721_v11 = vmul.f32 0.2, %v672_v10  ;;  %1175 = vmatprep.subr.bf16.mxu0 %v789_v2  ;;  %1206 = vmatprep.subr.bf16.mxu1 %v789_v2  ;;  %v736_v15 = vadd.f32 %v720_v6, %v1353_v27 }
 0x423   :  { %v739_v14 = vadd.f32 %v723_v9, %v1359_v31 }
 0x424   :  { %v737_v16 = vadd.f32 %v721_v11, %v1355_v28 }
 0x425   :  { %1176 = vmatpush3.bf16.msra.mxu0 %v789_v2  ;;  %1214 = vmatpush3.bf16.msra.mxu1 %v789_v2  ;;  %v791_v17 = vpack.c.bf16 %v739_v14, %v738_v12 }
 0x426   :  { %v1167_v19 = vpop.f32.mrb[24].mxu1  ;;  %v790_v20 = vpack.c.bf16 %v737_v16, %v736_v15 }
 0x427   :  { %v726_v21 = vmul.f32 0.2, %v1167_v19  ;;  %v685_v22 = vpop.f32.mrb[25].mxu1 }
 0x428   :  { %v724_v23 = vmul.f32 0.2, %v685_v22  ;;  %v1168_v25 = vpop.f32.mrb[26].mxu1  ;;  %1177 = vmatprep.subr.bf16.mxu0 %v790_v20  ;;  %1207 = vmatprep.subr.bf16.mxu1 %v790_v20 }
 0x429   :  { %v727_v26 = vmul.f32 0.2, %v1168_v25  ;;  %v688_v29 = vpop.f32.mrb[27].mxu1  ;;  %1178 = vmatpush3.bf16.msra.mxu0 %v790_v20  ;;  %1215 = vmatpush3.bf16.msra.mxu1 %v790_v20  ;;  %v742_v49 = vadd.f32 %v726_v21, %v1365_v34 }
 0x42a   :  { %v725_v48 = vmul.f32 0.2, %v688_v29  ;;  %1179 = vmatprep.subr.bf16.mxu0 %v791_v17  ;;  %1208 = vmatprep.subr.bf16.mxu1 %v791_v17  ;;  %v740_v51 = vadd.f32 %v724_v23, %v1361_v32 }
 0x42b   :  { %v743_v50 = vadd.f32 %v727_v26, %v1367_v35 }
 0x42c   :  { %v741_v52 = vadd.f32 %v725_v48, %v1363_v33 }
 0x42d   :  { %1180 = vmatpush3.bf16.msra.mxu0 %v791_v17  ;;  %1216 = vmatpush3.bf16.msra.mxu1 %v791_v17  ;;  %v793_v53 = vpack.c.bf16 %v743_v50, %v742_v49 }
 0x42e   :  { %v1171_v54 = vpop.f32.mrb[28].mxu1  ;;  %v792_v40 = vpack.c.bf16 %v741_v52, %v740_v51 }
 0x42f   :  { %v730_v55 = vmul.f32 0.2, %v1171_v54  ;;  %v701_v56 = vpop.f32.mrb[29].mxu1 }
 0x430   :  { %v728_v57 = vmul.f32 0.2, %v701_v56  ;;  %v1172_v58 = vpop.f32.mrb[30].mxu1  ;;  %1181 = vmatprep.subr.bf16.mxu0 %v792_v40  ;;  %1209 = vmatprep.subr.bf16.mxu1 %v792_v40 }
 0x431   :  { %v731_v59 = vmul.f32 0.2, %v1172_v58  ;;  %v704_v60 = vpop.f32.mrb[31].mxu1  ;;  %1182 = vmatpush3.bf16.msra.mxu0 %v792_v40  ;;  %1217 = vmatpush3.bf16.msra.mxu1 %v792_v40  ;;  %v746_v62 = vadd.f32 %v730_v55, %v1373_v38 }
 0x432   :  { %v729_v61 = vmul.f32 0.2, %v704_v60  ;;  %1183 = vmatprep.subr.bf16.mxu0 %v793_v53  ;;  %1210 = vmatprep.subr.bf16.mxu1 %v793_v53  ;;  %v744_v0 = vadd.f32 %v728_v57, %v1369_v36 }
 0x433   :  { %v747_v63 = vadd.f32 %v731_v59, %v1375_v39 }
 0x434   :  { %v745_v1 = vadd.f32 %v729_v61, %v1371_v37 }
 0x435   :  { %1184 = vmatpush3.bf16.msra.mxu0 %v793_v53  ;;  %1218 = vmatpush3.bf16.msra.mxu1 %v793_v53  ;;  %v795_v2 = vpack.c.bf16 %v747_v63, %v746_v62 }
 0x436   :  { %v794_v3 = vpack.c.bf16 %v745_v1, %v744_v0 }
 0x438   :  { %1185 = vmatprep.subr.bf16.mxu0 %v794_v3  ;;  %1211 = vmatprep.subr.bf16.mxu1 %v794_v3 }
 0x439   :  { %1186 = vmatpush3.bf16.msra.mxu0 %v794_v3  ;;  %1219 = vmatpush3.bf16.msra.mxu1 %v794_v3 }
 0x43a   :  { %1187 = vmatprep.subr.bf16.mxu0 %v795_v2  ;;  %1212 = vmatprep.subr.bf16.mxu1 %v795_v2 }
 0x43d   :  { %1188 = vmatpush3.bf16.msra.mxu0 %v795_v2  ;;  %1220 = vmatpush3.bf16.msra.mxu1 %v795_v2 }
 0x440   :  { %1190 = vmatmul.mubr.bf16.vlgmr.msra.gmra.mrb[32].mxu0 %v1381_v41  ;;  %1198 = vmatmul.mubr.bf16.vlgmr.msra.gmra.mrb[32].mxu1 %v1393_v45 }
 0x441   :  { %1193 = vmatprep.mubr.bf16.mxu0 %v1383_v42  ;;  %1201 = vmatprep.mubr.bf16.mxu1 %v1395_v46 }
 0x448   :  { %1194 = vmatmul.mubr.bf16.gmra.mrb[36].mxu0 %v1387_v43  ;;  %1202 = vmatmul.mubr.bf16.gmra.mrb[36].mxu1 %v1399_v47 }
 0x513   :  { %v1191_v4 = vpop.f32.mrb[32].mxu0  ;;  %v1199_v44 = vpop.f32.mrb[32].mxu1 }
 0x514   :  { %v895_v5 = vmul.f32 0.2, %v1191_v4  ;;  %v903_v6 = vmul.f32 0.2, %v1199_v44  ;;  %v830_v8 = vpop.f32.mrb[33].mxu0  ;;  %v862_v9 = vpop.f32.mrb[33].mxu1 }
 0x515   :  { %v893_v10 = vmul.f32 0.2, %v830_v8  ;;  %v901_v11 = vmul.f32 0.2, %v862_v9  ;;  %v1192_v12 = vpop.f32.mrb[34].mxu0  ;;  %v1200_v41 = vpop.f32.mrb[34].mxu1 }
 0x516   :  { %v911_v45 = vadd.f32 %v895_v5, %v1349_v18  ;;  %v919_v42 = vadd.f32 %v903_v6, %v1365_v34  ;;  %v896_v14 = vmul.f32 0.2, %v1192_v12  ;;  %v904_v46 = vmul.f32 0.2, %v1200_v41  ;;  %v833_v15 = vpop.f32.mrb[35].mxu0  ;;  %v865_v43 = vpop.f32.mrb[35].mxu1 }
 0x517   :  { %v909_v47 = vadd.f32 %v893_v10, %v1345_v7  ;;  %v917_v16 = vadd.f32 %v901_v11, %v1361_v32  ;;  %v894_v17 = vmul.f32 0.2, %v833_v15  ;;  %v902_v19 = vmul.f32 0.2, %v865_v43 }
 0x518   :  { %927 = vst [vmem:[#allocation7 + $0x10] sm:$0xff] %v911_v45  ;;  %935 = vst [vmem:[#allocation7 + $0x50] sm:$0xff] %v919_v42  ;;  %v912_v20 = vadd.f32 %v896_v14, %v1351_v24  ;;  %v920_v21 = vadd.f32 %v904_v46, %v1367_v35 }
 0x519   :  { %925 = vst [vmem:[#allocation7] sm:$0xff] %v909_v47  ;;  %933 = vst [vmem:[#allocation7 + $0x40] sm:$0xff] %v917_v16  ;;  %v910_v18 = vadd.f32 %v894_v17, %v1347_v13  ;;  %v918_v34 = vadd.f32 %v902_v19, %v1363_v33 }
 0x51a   :  { %928 = vst [vmem:[#allocation7 + $0x18] sm:$0xff] %v912_v20  ;;  %936 = vst [vmem:[#allocation7 + $0x58] sm:$0xff] %v920_v21 }
 0x51b   :  { %926 = vst [vmem:[#allocation7 + $0x8] sm:$0xff] %v910_v18  ;;  %934 = vst [vmem:[#allocation7 + $0x48] sm:$0xff] %v918_v34  ;;  %v1195_v7 = vpop.f32.mrb[36].mxu0  ;;  %v1203_v32 = vpop.f32.mrb[36].mxu1 }
 0x51c   :  { %v899_v22 = vmul.f32 0.2, %v1195_v7  ;;  %v907_v23 = vmul.f32 0.2, %v1203_v32  ;;  %v846_v25 = vpop.f32.mrb[37].mxu0  ;;  %v878_v24 = vpop.f32.mrb[37].mxu1 }
 0x51d   :  { %v897_v26 = vmul.f32 0.2, %v846_v25  ;;  %v905_v35 = vmul.f32 0.2, %v878_v24  ;;  %v1196_v29 = vpop.f32.mrb[38].mxu0  ;;  %v1204_v48 = vpop.f32.mrb[38].mxu1 }
 0x51e   :  { %v915_v13 = vadd.f32 %v899_v22, %v1357_v30  ;;  %v923_v33 = vadd.f32 %v907_v23, %v1373_v38  ;;  %v900_v49 = vmul.f32 0.2, %v1196_v29  ;;  %v908_v50 = vmul.f32 0.2, %v1204_v48  ;;  %v849_v51 = vpop.f32.mrb[39].mxu0  ;;  %v881_v52 = vpop.f32.mrb[39].mxu1 }
 0x51f   :  { %v913_v53 = vadd.f32 %v897_v26, %v1353_v27  ;;  %v921_v54 = vadd.f32 %v905_v35, %v1369_v36  ;;  %v898_v40 = vmul.f32 0.2, %v849_v51  ;;  %v906_v55 = vmul.f32 0.2, %v881_v52 }
 0x520   :  { %931 = vst [vmem:[#allocation7 + $0x30] sm:$0xff] %v915_v13  ;;  %939 = vst [vmem:[#allocation7 + $0x70] sm:$0xff] %v923_v33  ;;  %v916_v56 = vadd.f32 %v900_v49, %v1359_v31  ;;  %v924_v57 = vadd.f32 %v908_v50, %v1375_v39 }
 0x521   :  { %929 = vst [vmem:[#allocation7 + $0x20] sm:$0xff] %v913_v53  ;;  %937 = vst [vmem:[#allocation7 + $0x60] sm:$0xff] %v921_v54  ;;  %v914_v30 = vadd.f32 %v898_v40, %v1355_v28  ;;  %v922_v38 = vadd.f32 %v906_v55, %v1371_v37 }
 0x522   :  { %932 = vst [vmem:[#allocation7 + $0x38] sm:$0xff] %v916_v56  ;;  %940 = vst [vmem:[#allocation7 + $0x78] sm:$0xff] %v924_v57 }
 0x523   :  { %930 = vst [vmem:[#allocation7 + $0x28] sm:$0xff] %v914_v30  ;;  %938 = vst [vmem:[#allocation7 + $0x68] sm:$0xff] %v922_v38 }
 0x524   :  { %1281 = shalt.err (!%p1278_p6)
}
 0x525   :  { %s1282_s10 = scalar_lea.hbm %s1530_s2, 2048 }
 0x526   :  { %p1283_p7 = scmp.ne.s32.totalorder %s1530_s2, %s1282_s10  ;;  %p1286_p8 = scmp.lt.u32.totalorder %s1282_s10, %s1530_s2 }
 0x528   :  { %p1288_p9 = pnand %p1286_p8, %p1283_p7 }
 0x52a   :  { %1291 = shalt.err (!%p1288_p9)
}
 0x52b   :  { %952 = dma.vmem_to_hbm [thread:$0]  %s947_s6, 2048, %s1530_s2, [#allocation6], %s1299_s19, %s1299_s19, %s1300_s20  }
 0x52c   :  { %1296 = dma.done.wait [#allocation6], 2048  }
 0x52d   :  { %1297 = vsyncadd [#allocation6], 4294965248 }
 0x52e   :  { %956 = vsyncpa [#allocation5], 1 }
 0x52f   :  { %957 = vsyncpa [#allocation6], 1 }
 0x530   :  { %958 = vsyncmov [#allocation3] }
 0x533   :  { %s959_s17 = vpop.sfrf %958 }
 0x534   :  { %p964_p10 = scmp.ne.s32.totalorder %s959_s17, 0 }
 0x536   :  { %963 = shalt.err (%p964_p10)  }

</bundles_post_ra>
